<compile_context>
chip_gen: v5e
topology: v5e:2x2
jax: 0.10.0
libtpu: 0.0.40
codegen_flags: <defaults>
</compile_context>

<pallas_src>
import jax
import jax.numpy as jnp
from jax.experimental import pallas as pl
from jax.experimental.pallas import tpu as pltpu

BN_EPS = 1e-5


def _mfuses_kernel(x1_ref, x2_ref, w_ref, gb_ref, o_ref):
    # x1_ref, x2_ref: (B, C)   f32 inputs (the two halves of the channel concat)
    # w_ref:          (2C, C)  bf16 centre tap of the 3x3 conv weight (transposed)
    # gb_ref:         (2, C)   f32: row 0 = gamma, row 1 = beta
    # o_ref:          (B, C)   f32 output
    c = x1_ref.shape[1]
    x1 = x1_ref[...]
    x2 = x2_ref[...]

    # conv(cat(x1, x2), W)[centre tap]  ==  x1 @ W_top + x2 @ W_bot
    # (two split-K MXU pushes; no concat materialization, no scratch)
    y = jnp.dot(x1.astype(jnp.bfloat16), w_ref[0:c, :],
                preferred_element_type=jnp.float32)
    y = y + jnp.dot(x2.astype(jnp.bfloat16), w_ref[c:2 * c, :],
                    preferred_element_type=jnp.float32)          # (B, C) f32

    # BatchNorm2d (training mode): per-channel stats over (N, H, W); H=W=1 so
    # the reduction is over the batch rows only (biased variance), matching
    # PyTorch's batch-statistics path.
    # TODO(synk): eval-mode BN (running stats) would instead fold into a
    # per-channel scale/shift precomputed in the wrapper.
    mean = jnp.mean(y, axis=0, keepdims=True)
    var = jnp.mean(jnp.square(y - mean), axis=0, keepdims=True)
    y_hat = (y - mean) * jax.lax.rsqrt(var + BN_EPS)
    y_bn = y_hat * gb_ref[0:1, :] + gb_ref[1:2, :]

    y_act = jnp.maximum(y_bn, 0.0)                               # ReLU
    o_ref[...] = y_act + 0.5 * (x1 + x2)                         # + mean(x1, x2)


def mfuses_forward(x1, x2, conv_w, gamma, beta):
    """x1, x2: (B, C, 1, 1); conv_w: (C, 2C, 3, 3); gamma, beta: (C,)."""
    b, c_half, h, w = x1.shape
    assert h == 1 and w == 1, "MFuses view(b//17, 17, c) requires 1x1 spatial"
    assert b % 17 == 0

    # One-time parameter prep: weight centre tap, transposed and pre-cast to
    # bf16; gamma/beta packed into a single (2, C) slab.  Inputs stay f32 —
    # the bf16 cast for the MXU happens inside the kernel, the residual keeps
    # f32 precision.
    x1f = x1.reshape(b, c_half)
    x2f = x2.reshape(b, c_half)
    w_center = jnp.transpose(conv_w[:, :, 1, 1], (1, 0)).astype(jnp.bfloat16)
    gb = jnp.stack([gamma, beta], axis=0).astype(jnp.float32)      # (2, C)

    flops = 2 * b * (2 * c_half) * c_half + 8 * b * c_half
    bytes_accessed = (x1f.size * 4 + x2f.size * 4 + w_center.size * 2
                      + gb.size * 4 + b * c_half * 4)

    out = pl.pallas_call(
        _mfuses_kernel,
        out_shape=jax.ShapeDtypeStruct((b, c_half), jnp.float32),
        grid=(1,),
        in_specs=[
            pl.BlockSpec((b, c_half), lambda i: (0, 0)),
            pl.BlockSpec((b, c_half), lambda i: (0, 0)),
            pl.BlockSpec((2 * c_half, c_half), lambda i: (0, 0)),
            pl.BlockSpec((2, c_half), lambda i: (0, 0)),
        ],
        out_specs=pl.BlockSpec((b, c_half), lambda i: (0, 0)),
        cost_estimate=pl.CostEstimate(flops=flops,
                                      transcendentals=c_half,
                                      bytes_accessed=bytes_accessed),
        compiler_params=pltpu.CompilerParams(
            dimension_semantics=("arbitrary",)),
    )(x1f, x2f, w_center, gb)

    # Final `x.view(b // 17, 17, c)`.
    # TODO(synk): BN stats are over the whole (B, C) block; if B is ever tiled
    # across a grid, restructure BN as a two-phase (accumulate, normalize).
    return out.reshape(b // 17, 17, c_half)


def mfuses_reference_f32(x1, x2, conv_w, gamma, beta):
    """Pure-f32 JAX reference of the PyTorch forward (c == 256 branch)."""
    x = jnp.concatenate([x1, x2], axis=1)  # (B, 2C, 1, 1)
    y = jax.lax.conv_general_dilated(
        x, conv_w, window_strides=(2, 2), padding=((1, 1), (1, 1)),
        dimension_numbers=("NCHW", "OIHW", "NCHW"))
    mean = jnp.mean(y, axis=(0, 2, 3), keepdims=True)
    var = jnp.mean(jnp.square(y - mean), axis=(0, 2, 3), keepdims=True)
    y = (y - mean) * jax.lax.rsqrt(var + BN_EPS)
    y = y * gamma.reshape(1, -1, 1, 1) + beta.reshape(1, -1, 1, 1)
    y = jnp.maximum(y, 0.0)
    x_t = 0.5 * (x1 + x2)
    out = x_t + y
    b, c, _, _ = out.shape
    return out.reshape(b // 17, 17, c)


def mfuses_reference_mixed(x1, x2, conv_w, gamma, beta):
    """Same math as the kernel (split-K bf16 matmuls, f32 accumulate/epilogue)."""
    b, c, _, _ = x1.shape
    x1f = x1.reshape(b, c)
    x2f = x2.reshape(b, c)
    w_center = jnp.transpose(conv_w[:, :, 1, 1], (1, 0)).astype(jnp.bfloat16)
    y = jnp.dot(x1f.astype(jnp.bfloat16), w_center[0:c, :],
                preferred_element_type=jnp.float32)
    y = y + jnp.dot(x2f.astype(jnp.bfloat16), w_center[c:2 * c, :],
                    preferred_element_type=jnp.float32)
    mean = jnp.mean(y, axis=0, keepdims=True)
    var = jnp.mean(jnp.square(y - mean), axis=0, keepdims=True)
    y = (y - mean) * jax.lax.rsqrt(var + BN_EPS)
    y = y * gamma.reshape(1, -1) + beta.reshape(1, -1)
    y = jnp.maximum(y, 0.0)
    out = y + 0.5 * (x1f + x2f)
    return out.reshape(b // 17, 17, c)


if __name__ == "__main__":
    key = jax.random.PRNGKey(0)
    k1, k2, k3, k4, k5 = jax.random.split(key, 5)

    B, C = 34, 128  # x1, x2 have 128 channels -> concat c == 256 -> decoder1
    x1 = jax.random.normal(k1, (B, C, 1, 1), jnp.float32)
    x2 = jax.random.normal(k2, (B, C, 1, 1), jnp.float32)

    # Deterministic parameter init (kaiming-uniform-like for the conv weight).
    fan_in = 2 * C * 3 * 3
    bound = (3.0 / fan_in) ** 0.5
    conv_w = jax.random.uniform(k3, (C, 2 * C, 3, 3), jnp.float32, -bound, bound)
    gamma = 1.0 + 0.1 * jax.random.normal(k4, (C,), jnp.float32)
    beta = 0.1 * jax.random.normal(k5, (C,), jnp.float32)

    out = mfuses_forward(x1, x2, conv_w, gamma, beta)
    out = jax.block_until_ready(out)
    assert out.shape == (B // 17, 17, C), out.shape

    # Tight check vs a reference using the identical split-K bf16 matmul math.
    ref_mixed = mfuses_reference_mixed(x1, x2, conv_w, gamma, beta)
    err_mixed = float(jnp.max(jnp.abs(out - ref_mixed)))
    assert jnp.allclose(out, ref_mixed, atol=1e-3, rtol=1e-3), err_mixed

    # Loose check vs the full-f32 PyTorch-equivalent reference (bf16 MXU
    # operands introduce ~1e-2-level absolute error after BN normalization).
    ref_f32 = mfuses_reference_f32(x1, x2, conv_w, gamma, beta)
    err_f32 = float(jnp.max(jnp.abs(out - ref_f32)))
    assert jnp.allclose(out, ref_f32, atol=5e-2, rtol=5e-2), err_f32

    print("KERNEL_OK")
</pallas_src>

<mosaic_0001>
module attributes {stable_mosaic.version = 11 : i64} {
  func.func @_mfuses_kernel(%arg0: i32, %arg1: memref<34x128xf32, #tpu.memory_space<vmem>>, %arg2: memref<34x128xf32, #tpu.memory_space<vmem>>, %arg3: memref<256x128xbf16, #tpu.memory_space<vmem>>, %arg4: memref<2x128xf32, #tpu.memory_space<vmem>>, %arg5: memref<34x128xf32, #tpu.memory_space<vmem>>) attributes {dimension_semantics = [#tpu.dimension_semantics<arbitrary>], iteration_bounds = array<i64: 1>, scalar_prefetch = 0 : i64, scratch_operands = 0 : i64, tpu.core_type = #tpu.core_type<tc>, window_params = [{pipeline_mode = #tpu.pipeline_mode<synchronous>, transform_indices = @transform_0, window_bounds = array<i64: 34, 128>}, {pipeline_mode = #tpu.pipeline_mode<synchronous>, transform_indices = @transform_1, window_bounds = array<i64: 34, 128>}, {pipeline_mode = #tpu.pipeline_mode<synchronous>, transform_indices = @transform_2, window_bounds = array<i64: 256, 128>}, {pipeline_mode = #tpu.pipeline_mode<synchronous>, transform_indices = @transform_3, window_bounds = array<i64: 2, 128>}, {pipeline_mode = #tpu.pipeline_mode<synchronous>, transform_indices = @transform_4, window_bounds = array<i64: 34, 128>}]} {
    %c0 = arith.constant 0 : index
    %c0_0 = arith.constant 0 : index
    %0 = vector.load %arg1[%c0, %c0_0] : memref<34x128xf32, #tpu.memory_space<vmem>>, vector<34x128xf32>
    %c0_1 = arith.constant 0 : index
    %c0_2 = arith.constant 0 : index
    %1 = vector.load %arg2[%c0_1, %c0_2] : memref<34x128xf32, #tpu.memory_space<vmem>>, vector<34x128xf32>
    %2 = arith.truncf %0 : vector<34x128xf32> to vector<34x128xbf16>
    %c0_3 = arith.constant 0 : index
    %c0_4 = arith.constant 0 : index
    %3 = vector.load %arg3[%c0_3, %c0_4] : memref<256x128xbf16, #tpu.memory_space<vmem>>, vector<128x128xbf16>
    %cst = arith.constant dense<0.000000e+00> : vector<34x128xf32>
    %4 = tpu.matmul %2, %3, %cst {dimension_numbers = #tpu.dot_dimension_numbers<[1], [0], [0], [1], [0, 0, 1, 1], [], []>} : vector<34x128xbf16>, vector<128x128xbf16>, vector<34x128xf32> -> vector<34x128xf32>
    %5 = arith.truncf %1 : vector<34x128xf32> to vector<34x128xbf16>
    %c128 = arith.constant 128 : index
    %c0_5 = arith.constant 0 : index
    %6 = vector.load %arg3[%c128, %c0_5] : memref<256x128xbf16, #tpu.memory_space<vmem>>, vector<128x128xbf16>
    %cst_6 = arith.constant dense<0.000000e+00> : vector<34x128xf32>
    %7 = tpu.matmul %5, %6, %cst_6 {dimension_numbers = #tpu.dot_dimension_numbers<[1], [0], [0], [1], [0, 0, 1, 1], [], []>} : vector<34x128xbf16>, vector<128x128xbf16>, vector<34x128xf32> -> vector<34x128xf32>
    %8 = arith.addf %4, %7 : vector<34x128xf32>
    %cst_7 = arith.constant dense<0.000000e+00> : vector<128xf32>
    %9 = vector.multi_reduction <add>, %8, %cst_7 [0] : vector<34x128xf32> to vector<128xf32>
    %10 = vector.shape_cast %9 : vector<128xf32> to vector<1x128xf32>
    %cst_8 = arith.constant 3.400000e+01 : f32
    %11 = vector.broadcast %cst_8 : f32 to vector<1x128xf32>
    %12 = arith.divf %10, %11 : vector<1x128xf32>
    %13 = vector.broadcast %12 : vector<1x128xf32> to vector<34x128xf32>
    %14 = arith.subf %8, %13 : vector<34x128xf32>
    %15 = arith.mulf %14, %14 : vector<34x128xf32>
    %cst_9 = arith.constant dense<0.000000e+00> : vector<128xf32>
    %16 = vector.multi_reduction <add>, %15, %cst_9 [0] : vector<34x128xf32> to vector<128xf32>
    %17 = vector.shape_cast %16 : vector<128xf32> to vector<1x128xf32>
    %cst_10 = arith.constant 3.400000e+01 : f32
    %18 = vector.broadcast %cst_10 : f32 to vector<1x128xf32>
    %19 = arith.divf %17, %18 : vector<1x128xf32>
    %20 = vector.broadcast %12 : vector<1x128xf32> to vector<34x128xf32>
    %21 = arith.subf %8, %20 : vector<34x128xf32>
    %cst_11 = arith.constant 9.99999974E-6 : f32
    %22 = vector.broadcast %cst_11 : f32 to vector<1x128xf32>
    %23 = arith.addf %19, %22 : vector<1x128xf32>
    %24 = math.rsqrt %23 : vector<1x128xf32>
    %25 = vector.broadcast %24 : vector<1x128xf32> to vector<34x128xf32>
    %26 = arith.mulf %21, %25 : vector<34x128xf32>
    %c0_12 = arith.constant 0 : index
    %c0_13 = arith.constant 0 : index
    %27 = vector.load %arg4[%c0_12, %c0_13] : memref<2x128xf32, #tpu.memory_space<vmem>>, vector<1x128xf32>
    %28 = vector.broadcast %27 : vector<1x128xf32> to vector<34x128xf32>
    %29 = arith.mulf %26, %28 : vector<34x128xf32>
    %c1 = arith.constant 1 : index
    %c0_14 = arith.constant 0 : index
    %30 = vector.load %arg4[%c1, %c0_14] : memref<2x128xf32, #tpu.memory_space<vmem>>, vector<1x128xf32>
    %31 = vector.broadcast %30 : vector<1x128xf32> to vector<34x128xf32>
    %32 = arith.addf %29, %31 : vector<34x128xf32>
    %cst_15 = arith.constant 0.000000e+00 : f32
    %33 = vector.broadcast %cst_15 : f32 to vector<34x128xf32>
    %34 = arith.maximumf %32, %33 : vector<34x128xf32>
    %35 = arith.addf %0, %1 : vector<34x128xf32>
    %cst_16 = arith.constant 5.000000e-01 : f32
    %36 = vector.broadcast %cst_16 : f32 to vector<34x128xf32>
    %37 = arith.mulf %36, %35 : vector<34x128xf32>
    %38 = arith.addf %34, %37 : vector<34x128xf32>
    %c0_17 = arith.constant 0 : index
    %c0_18 = arith.constant 0 : index
    %39 = vector.load %arg5[%c0_17, %c0_18] : memref<34x128xf32, #tpu.memory_space<vmem>>, vector<34x128xf32>
    tpu.vector_store %arg5[%c0_17, %c0_18], %38 {strides = array<i32>} : memref<34x128xf32, #tpu.memory_space<vmem>>, vector<34x128xf32>,
    return
  }
  func.func @transform_0(%arg0: i32) -> (i32, i32) {
    %c0_i32 = arith.constant 0 : i32
    %c0_i32_0 = arith.constant 0 : i32
    %c0_i32_1 = arith.constant 0 : i32
    return %c0_i32, %c0_i32_0 : i32, i32
  }
  func.func @transform_1(%arg0: i32) -> (i32, i32) {
    %c0_i32 = arith.constant 0 : i32
    %c0_i32_0 = arith.constant 0 : i32
    %c0_i32_1 = arith.constant 0 : i32
    return %c0_i32, %c0_i32_0 : i32, i32
  }
  func.func @transform_2(%arg0: i32) -> (i32, i32) {
    %c0_i32 = arith.constant 0 : i32
    %c0_i32_0 = arith.constant 0 : i32
    %c0_i32_1 = arith.constant 0 : i32
    return %c0_i32, %c0_i32_0 : i32, i32
  }
  func.func @transform_3(%arg0: i32) -> (i32, i32) {
    %c0_i32 = arith.constant 0 : i32
    %c0_i32_0 = arith.constant 0 : i32
    %c0_i32_1 = arith.constant 0 : i32
    return %c0_i32, %c0_i32_0 : i32, i32
  }
  func.func @transform_4(%arg0: i32) -> (i32, i32) {
    %c0_i32 = arith.constant 0 : i32
    %c0_i32_0 = arith.constant 0 : i32
    %c0_i32_1 = arith.constant 0 : i32
    return %c0_i32, %c0_i32_0 : i32, i32
  }
}

</mosaic_0001>

<bundles_post_ra>
// kernel: tpu_custom_call.1
= control target key start
LH: loop header
LB: loop body
LE: loop exit
PB: predicated region body
PF: predicated region fallthrough
CT: control target
= control target key end

     0   :  { %9 = vsyncpa [#allocation3], 0  ;;  %s663_s0 = inlined_call_operand.hbm [shape: f32[34,128], index: 0, kind: input, shape index: {}]   ;;  %s664_s1 = inlined_call_operand.hbm [shape: f32[34,128], index: 1, kind: input, shape index: {}]   ;;  %s665_s2 = inlined_call_operand.hbm [shape: bf16[256,128], index: 2, kind: input, shape index: {}]   ;;  %s666_s3 = inlined_call_operand.vmem [shape: f32[2,128], index: 3, kind: input, shape index: {}]   ;;  %s667_s4 = inlined_call_operand.hbm [shape: f32[34,128], index: 4, kind: output, shape index: {}]  }
   0x1   :  { %10 = vsyncpa [#allocation6], 0 }
   0x2   :  { %11 = vsyncpa [#allocation4], 0  ;;  %s29_s17 = sshll.u32 %s664_s1, 4  ;;  %s585_s18 = smov [#allocation5]   ;;  %s30_s17 = int_to_ptr.hbm [resolvable:$true] %s29_s17 }
   0x3   :  { %s31_s19 = sshll.u32 %s585_s18, 4  ;;  %s16_s22 = sshll.u32 %s663_s0, 4  ;;  %s32_s19 = int_to_ptr.vmem [resolvable:$true] %s31_s19  ;;  %s17_s22 = int_to_ptr.hbm [resolvable:$true] %s16_s22 }
   0x4   :  { %s586_s23 = smov 128   ;;  %s587_s24 = smov 8  }
   0x5   :  { %37 = dma.hbm_to_vmem [thread:$0]  %s30_s17, 640, %s32_s19, [#allocation6], %s586_s23, %s586_s23, %s587_s24  }
   0x6   :  { %s588_s25 = smov [#allocation2]   ;;  %s42_s1 = sshll.u32 %s665_s2, 4  ;;  %s43_s1 = int_to_ptr.hbm [resolvable:$true] %s42_s1 }
   0x7   :  { %s18_s26 = sshll.u32 %s588_s25, 4  ;;  %s589_s0 = smov [#allocation7]   ;;  %s19_s26 = int_to_ptr.vmem [resolvable:$true] %s18_s26 }
   0x8   :  { %24 = dma.hbm_to_vmem [thread:$0]  %s17_s22, 640, %s19_s26, [#allocation3], %s586_s23, %s586_s23, %s587_s24  }
   0x9   :  { %s44_s29 = sshll.u32 %s589_s0, 4  ;;  %s590_s30 = smov 64   ;;  %s45_s29 = int_to_ptr.vmem [resolvable:$true] %s44_s29 }
   0xa   :  { %s591_s5 = smov 4  }
   0xb   :  { %50 = dma.hbm_to_vmem [thread:$0]  %s43_s1, 2048, %s45_s29, [#allocation6], %s590_s30, %s590_s30, %s591_s5  }
   0xc   :  { %579 = dma.done.wait [#allocation3], 640  }
   0xd   :  { %580 = vsyncadd [#allocation3], 4294966656 }
   0xe   :  { %581 = dma.done.wait [#allocation6], 2688  }
   0xf   :  { %582 = vsyncadd [#allocation6], 4294964608  ;;  %v451_v0 = vld [vmem:[#allocation7 + $0x78] sm:$0xff]  ;;  %v450_v2 = vld [vmem:[#allocation7 + $0x70] sm:$0xff]  ;;  %v592_v43 = vmov 34.0   ;;  %vm258_vm0 = vcmask 1041408  }
  0x10   :  { %v443_v1 = vld [vmem:[#allocation7 + $0x38] sm:$0xff]  ;;  %161 = vmatpush.bf16.msra.mxu0 %v451_v0  ;;  %452 = vmatpush.bf16.msra.mxu2 %v451_v0  ;;  %v442_v3 = vld [vmem:[#allocation7 + $0x30] sm:$0xff]  ;;  %v449_v4 = vld [vmem:[#allocation7 + $0x68] sm:$0xff]  ;;  %479 = vrcp.f32 %v592_v43  ;;  %s358_s12 = sshll.u32 %s667_s4, 4  ;;  %s359_s12 = int_to_ptr.hbm [resolvable:$true] %s358_s12 }
  0x11   :  { %232 = vmatpush.bf16.msra.mxu1 %v443_v1  ;;  %460 = vmatpush.bf16.msra.mxu3 %v443_v1  ;;  %v441_v5 = vld [vmem:[#allocation7 + $0x28] sm:$0xff]  ;;  %v70_v6 = vld [vmem:[#allocation5] sm:$0xff]  ;;  %v71_v7 = vld [vmem:[#allocation5 + $0x8] sm:$0xff] }
  0x12   :  { %v72_v8 = vld [vmem:[#allocation5 + $0x10] sm:$0xff]  ;;  %v65_v9 = vld [vmem:[#allocation2] sm:$0xff]  ;;  %v66_v11 = vld [vmem:[#allocation2 + $0x8] sm:$0xff]  ;;  %v94_v31 = vpack.c.bf16 %v71_v7, %v70_v6 }
  0x13   :  { %v73_v10 = vld [vmem:[#allocation5 + $0x18] sm:$0xff]  ;;  %v634_v12 = vadd.f32 %v70_v6, %v65_v9  ;;  %v67_v13 = vld [vmem:[#allocation2 + $0x10] sm:$0xff]  ;;  %v636_v14 = vadd.f32 %v71_v7, %v66_v11  ;;  %v68_v15 = vld [vmem:[#allocation2 + $0x18] sm:$0xff]  ;;  %v75_v33 = vpack.c.bf16 %v66_v11, %v65_v9 }
  0x14   :  { %162 = vmatpush.bf16.msra.mxu0 %v450_v2  ;;  %453 = vmatpush.bf16.msra.mxu2 %v450_v2  ;;  %v638_v16 = vadd.f32 %v72_v8, %v67_v13  ;;  %v640_v17 = vadd.f32 %v73_v10, %v68_v15  ;;  %v448_v18 = vld [vmem:[#allocation7 + $0x60] sm:$0xff]  ;;  %v447_v20 = vld [vmem:[#allocation7 + $0x58] sm:$0xff]  ;;  %v69_v23 = vld [vmem:[#allocation2 + $0x20] sm:$0x3]  ;;  %v95_v32 = vpack.c.bf16 %v73_v10, %v72_v8 }
  0x15   :  { %233 = vmatpush.bf16.msra.mxu1 %v442_v3  ;;  %461 = vmatpush.bf16.msra.mxu3 %v442_v3  ;;  %v440_v19 = vld [vmem:[#allocation7 + $0x20] sm:$0xff]  ;;  %v439_v21 = vld [vmem:[#allocation7 + $0x18] sm:$0xff]  ;;  %v446_v24 = vld [vmem:[#allocation7 + $0x50] sm:$0xff]  ;;  %v76_v34 = vpack.c.bf16 %v68_v15, %v67_v13  ;;  %v77_v36 = vpack.c.bf16 %v69_v23, %v69_v23 }
  0x16   :  { %v74_v22 = vld [vmem:[#allocation5 + $0x20] sm:$0x3]  ;;  %v438_v26 = vld [vmem:[#allocation7 + $0x10] sm:$0xff]  ;;  %v445_v27 = vld [vmem:[#allocation7 + $0x48] sm:$0xff]  ;;  %v480_v48 = vpop.eup %479 }
  0x17   :  { %v642_v25 = vadd.f32 %v74_v22, %v69_v23  ;;  %v437_v28 = vld [vmem:[#allocation7 + $0x8] sm:$0xff]  ;;  %v444_v29 = vld [vmem:[#allocation7 + $0x40] sm:$0xff]  ;;  %v96_v35 = vpack.c.bf16 %v74_v22, %v74_v22  ;;  %v268_v53 = vmul.f32 34.0, %v480_v48  ;;  %vm272_vm1 = vweird.f32 %v480_v48  ;;  %v477_v43 = vld [vmem:[%s666_s3] ss:$0 sm:$0xff] }
  0x18   :  { %163 = vmatpush.bf16.msra.mxu0 %v449_v4  ;;  %454 = vmatpush.bf16.msra.mxu2 %v449_v4  ;;  %v436_v30 = vld [vmem:[#allocation7] sm:$0xff] }
  0x19   :  { %234 = vmatpush.bf16.msra.mxu1 %v441_v5  ;;  %462 = vmatpush.bf16.msra.mxu3 %v441_v5  ;;  %v269_v59 = vsub.f32 1.0, %v268_v53 }
  0x1b   :  { %v270_v62 = vmul.f32 %v480_v48, %v269_v59 }
  0x1c   :  { %164 = vmatpush.bf16.msra.mxu0 %v448_v18  ;;  %455 = vmatpush.bf16.msra.mxu2 %v448_v18 }
  0x1d   :  { %235 = vmatpush.bf16.msra.mxu1 %v440_v19  ;;  %463 = vmatpush.bf16.msra.mxu3 %v440_v19  ;;  %v271_v3 = vadd.f32 %v480_v48, %v270_v62  ;;  %v339_v62 = vmul.f32 0.5, %v638_v16 }
  0x1f   :  { %v273_v6 = vsel %vm272_vm1, %v480_v48, %v271_v3 }
  0x20   :  { %165 = vmatpush.bf16.msra.mxu0 %v447_v20  ;;  %456 = vmatpush.bf16.msra.mxu2 %v447_v20 }
  0x21   :  { %236 = vmatpush.bf16.msra.mxu1 %v439_v21  ;;  %464 = vmatpush.bf16.msra.mxu3 %v439_v21 }
  0x24   :  { %166 = vmatpush.bf16.msra.mxu0 %v446_v24  ;;  %457 = vmatpush.bf16.msra.mxu2 %v446_v24 }
  0x25   :  { %237 = vmatpush.bf16.msra.mxu1 %v438_v26  ;;  %465 = vmatpush.bf16.msra.mxu3 %v438_v26 }
  0x28   :  { %167 = vmatpush.bf16.msra.mxu0 %v445_v27  ;;  %458 = vmatpush.bf16.msra.mxu2 %v445_v27 }
  0x29   :  { %238 = vmatpush.bf16.msra.mxu1 %v437_v28  ;;  %466 = vmatpush.bf16.msra.mxu3 %v437_v28 }
  0x2c   :  { %168 = vmatpush.bf16.msra.mxu0 %v444_v29  ;;  %459 = vmatpush.bf16.msra.mxu2 %v444_v29 }
  0x2d   :  { %239 = vmatpush.bf16.msra.mxu1 %v436_v30  ;;  %467 = vmatpush.bf16.msra.mxu3 %v436_v30 }
  0x2f   :  { %169 = vmatmul.bf16.vlgmr.msra.gmra.mxu0 %v94_v31  ;;  %174 = vmatmul.bf16.vlgmr.msra.gmra.mxu2 %v95_v32 }
  0x30   :  { %240 = vmatmul.bf16.vlgmr.msra.gmra.mxu1 %v75_v33  ;;  %245 = vmatmul.bf16.vlgmr.msra.gmra.mxu3 %v76_v34 }
  0x3f   :  { %179 = vmatmul.bf16.gmra.mxu2 %v96_v35 }
  0x40   :  { %250 = vmatmul.bf16.gmra.mxu3 %v77_v36 }
  0xac   :  { %v170_v37 = vpop.f32.mrf.mxu0 }
  0xad   :  { %v241_v38 = vpop.f32.mrf.mxu1 }
  0xae   :  { %v242_v45 = vadd.f32 %v241_v38, %v170_v37 }
  0xb2   :  { %v175_v39 = vpop.f32.mrf.mxu2 }
  0xb3   :  { %v246_v40 = vpop.f32.mrf.mxu3 }
  0xb4   :  { %v172_v41 = vpop.f32.mrf.mxu0  ;;  %v247_v50 = vadd.f32 %v246_v40, %v175_v39 }
  0xb5   :  { %v243_v42 = vpop.f32.mrf.mxu1 }
  0xb6   :  { %v244_v46 = vadd.f32 %v243_v42, %v172_v41 }
  0xb8   :  { %v255_v49 = vadd.f32 %v244_v46, %v242_v45 }
  0xba   :  { %v177_v44 = vpop.f32.mrf.mxu2  ;;  %v256_v54 = vadd.f32 %v255_v49, %v247_v50  ;;  %v478_v49 = vld [vmem:[%s666_s3 + $0x1] ss:$0 sm:$0xff]  ;;  %s593_s3 = smov [#allocation8]  }
  0xbb   :  { %v248_v47 = vpop.f32.mrf.mxu3  ;;  %s356_s9 = sshll.u32 %s593_s3, 4  ;;  %s357_s9 = int_to_ptr.vmem [resolvable:$true] %s356_s9 }
  0xbc   :  { %v249_v51 = vadd.f32 %v248_v47, %v177_v44 }
  0xbe   :  { %v257_v57 = vadd.f32 %v256_v54, %v249_v51 }
  0xc2   :  { %v180_v52 = vpop.f32.mrf.mxu2 }
  0xc3   :  { %v251_v55 = vpop.f32.mrf.mxu3 }
  0xc4   :  { %v252_v56 = vadd.f32 %v251_v55, %v180_v52  ;;  %v337_v55 = vmul.f32 0.5, %v634_v12 }
  0xc6   :  { %v259_v58 = vsel %vm258_vm0, %v252_v56, 0.0 }
  0xc7   :  { %v260_v60 = vadd.f32 %v259_v58, %v257_v57 }
  0xc9   :  { %v261_v61 = vrot.slane %v260_v60, 4 }
  0xca   :  { %v182_v63 = vpop.f32.mrf.mxu2 }
  0xcb   :  { %v262_v0 = vadd.f32 %v261_v61, %v260_v60  ;;  %v253_v1 = vpop.f32.mrf.mxu3  ;;  %v340_v63 = vmul.f32 0.5, %v640_v17 }
  0xcd   :  { %v263_v2 = vrot.slane %v262_v0, 2 }
  0xcf   :  { %v264_v4 = vadd.f32 %v263_v2, %v262_v0  ;;  %v341_v0 = vmul.f32 0.5, %v642_v25 }
  0xd1   :  { %v265_v5 = vrot.slane %v264_v4, 1 }
  0xd3   :  { %v266_v7 = vadd.f32 %v265_v5, %v264_v4 }
  0xd5   :  { %v274_v8 = vmul.f32 %v273_v6, %v266_v7 }
  0xd7   :  { %v275_v9 = vsub.f32 %v242_v45, %v274_v8  ;;  %v276_v10 = vsub.f32 %v244_v46, %v274_v8  ;;  %v277_v11 = vsub.f32 %v247_v50, %v274_v8  ;;  %v279_v13 = vsub.f32 %v252_v56, %v274_v8 }
  0xd8   :  { %v278_v15 = vsub.f32 %v249_v51, %v274_v8  ;;  %v338_v56 = vmul.f32 0.5, %v636_v14 }
  0xd9   :  { %v280_v18 = vmul.f32 %v275_v9, %v275_v9  ;;  %v281_v19 = vmul.f32 %v276_v10, %v276_v10  ;;  %v282_v20 = vmul.f32 %v277_v11, %v277_v11  ;;  %v284_v22 = vmul.f32 %v279_v13, %v279_v13 }
  0xda   :  { %v283_v23 = vmul.f32 %v278_v15, %v278_v15 }
  0xdb   :  { %v285_v21 = vadd.f32 %v281_v19, %v280_v18  ;;  %v288_v27 = vsel %vm258_vm0, %v284_v22, 0.0 }
  0xdd   :  { %v286_v24 = vadd.f32 %v285_v21, %v282_v20 }
  0xdf   :  { %v287_v26 = vadd.f32 %v286_v24, %v283_v23 }
  0xe1   :  { %v289_v28 = vadd.f32 %v288_v27, %v287_v26 }
  0xe3   :  { %v290_v29 = vrot.slane %v289_v28, 4 }
  0xe5   :  { %v291_v30 = vadd.f32 %v290_v29, %v289_v28 }
  0xe7   :  { %v292_v31 = vrot.slane %v291_v30, 2 }
  0xe9   :  { %v293_v32 = vadd.f32 %v292_v31, %v291_v30 }
  0xeb   :  { %v294_v33 = vrot.slane %v293_v32, 1 }
  0xed   :  { %v295_v34 = vadd.f32 %v294_v33, %v293_v32 }
  0xef   :  { %v296_v35 = vmul.f32 %v295_v34, %v273_v6 }
  0xf1   :  { %v297_v36 = vadd.f32 1e-05, %v296_v35 }
  0xf3   :  { %481 = vrsqrt.f32 %v297_v36  ;;  %vm304_vm3 = vweird.f32 %v297_v36 }
  0xf9   :  { %v482_v37 = vpop.eup %481 }
  0xfa   :  { %v299_v38 = vmul.f32 %v482_v37, %v297_v36  ;;  %vm305_vm2 = vweird.f32 %v482_v37 }
  0xfb   :  { %vm306_vm4 = vmor %vm304_vm3, %vm305_vm2 }
  0xfc   :  { %v300_v39 = vmul.f32 %v482_v37, %v299_v38 }
  0xfe   :  { %v301_v40 = vmul.f32 0.5, %v300_v39 }
 0x100   :  { %v302_v41 = vsub.f32 1.5, %v301_v40 }
 0x102   :  { %v303_v42 = vmul.f32 %v482_v37, %v302_v41 }
 0x104   :  { %v307_v44 = vsel %vm306_vm4, %v482_v37, %v303_v42 }
 0x105   :  { %v308_v45 = vmul.f32 %v307_v44, %v275_v9  ;;  %v309_v46 = vmul.f32 %v307_v44, %v276_v10  ;;  %v310_v47 = vmul.f32 %v307_v44, %v277_v11  ;;  %v311_v48 = vmul.f32 %v307_v44, %v278_v15 }
 0x106   :  { %v312_v50 = vmul.f32 %v307_v44, %v279_v13 }
 0x107   :  { %v315_v51 = vmul.f32 %v477_v43, %v308_v45  ;;  %v316_v52 = vmul.f32 %v477_v43, %v309_v46  ;;  %v317_v53 = vmul.f32 %v477_v43, %v310_v47  ;;  %v318_v54 = vmul.f32 %v477_v43, %v311_v48 }
 0x108   :  { %v319_v57 = vmul.f32 %v477_v43, %v312_v50 }
 0x109   :  { %v324_v58 = vadd.f32 %v478_v49, %v317_v53  ;;  %v325_v59 = vadd.f32 %v478_v49, %v318_v54  ;;  %v322_v60 = vadd.f32 %v478_v49, %v315_v51  ;;  %v323_v61 = vadd.f32 %v478_v49, %v316_v52 }
 0x10a   :  { %v326_v1 = vadd.f32 %v478_v49, %v319_v57 }
 0x10b   :  { %v330_v2 = vmax.f32 %v325_v59, 0.0  ;;  %v327_v3 = vmax.f32 %v322_v60, 0.0  ;;  %v328_v4 = vmax.f32 %v323_v61, 0.0  ;;  %v329_v5 = vmax.f32 %v324_v58, 0.0 }
 0x10c   :  { %v331_v6 = vmax.f32 %v326_v1, 0.0 }
 0x10d   :  { %v342_v12 = vadd.f32 %v337_v55, %v327_v3  ;;  %v343_v7 = vadd.f32 %v338_v56, %v328_v4  ;;  %v344_v8 = vadd.f32 %v339_v62, %v329_v5  ;;  %v345_v16 = vadd.f32 %v340_v63, %v330_v2 }
 0x10e   :  { %v346_v14 = vadd.f32 %v341_v0, %v331_v6 }
 0x10f   :  { %347 = vst [vmem:[#allocation8] sm:$0xff] %v342_v12 }
 0x110   :  { %351 = vst [vmem:[#allocation8 + $0x20] sm:$0x3] %v346_v14 }
 0x111   :  { %348 = vst [vmem:[#allocation8 + $0x8] sm:$0xff] %v343_v7 }
 0x112   :  { %349 = vst [vmem:[#allocation8 + $0x10] sm:$0xff] %v344_v8 }
 0x113   :  { %350 = vst [vmem:[#allocation8 + $0x18] sm:$0xff] %v345_v16 }
 0x114   :  { %364 = dma.vmem_to_hbm [thread:$0]  %s357_s9, 640, %s359_s12, [#allocation4], %s586_s23, %s586_s23, %s587_s24  }
 0x115   :  { %583 = dma.done.wait [#allocation4], 640  }
 0x116   :  { %584 = vsyncadd [#allocation4], 4294966656 }
 0x117   :  { %369 = vsyncpa [#allocation3], 1 }
 0x118   :  { %370 = vsyncpa [#allocation6], 1 }
 0x119   :  { %371 = vsyncpa [#allocation4], 1 }

</bundles_post_ra>
